<compile_context>
chip_gen: v7x
topology: tpu7x:2x2x1
jax: 0.10.0
libtpu: 0.0.40
codegen_flags: <defaults>
</compile_context>

<pallas_src>
import functools

import jax
import jax.numpy as jnp
from jax.experimental import pallas as pl
from jax.experimental.pallas import tpu as pltpu

LANE = 128  # lane width; hidden dims (100, 50) are zero-padded to this


def irisnet_kernel(x_ref, w1_ref, b1_ref, w2_ref, b2_ref, w3_ref, b3_ref, o_ref):
    x = x_ref[...]                                   # (tb, 4)
    # fc1 on the VPU: 4 broadcast FMAs instead of a K=4 MXU matmul (zero padding
    # of the hidden dim is inert through ReLU and the following matmuls).
    h1 = b1_ref[...] + x[:, 0:1] * w1_ref[0:1, :]
    for k in range(1, x.shape[1]):
        h1 = h1 + x[:, k : k + 1] * w1_ref[k : k + 1, :]
    h1 = jnp.maximum(h1, 0.0)                        # (tb, 128)
    # fc2 + relu (MXU, [tb,128] @ [128,128])
    h2 = jnp.dot(h1, w2_ref[...], preferred_element_type=jnp.float32)
    h2 = jnp.maximum(h2 + b2_ref[...], 0.0)
    # fc3 logits (MXU, [tb,128] @ [128,3]) -> narrow (tb,3) store, no padded lanes
    h3 = jnp.dot(h2, w3_ref[...], preferred_element_type=jnp.float32)
    o_ref[...] = (h3 + b3_ref[...]).astype(o_ref.dtype)


def _pad2d(a, rows, cols):
    return jnp.zeros((rows, cols), a.dtype).at[: a.shape[0], : a.shape[1]].set(a)


def prepare_params(params):
    """Pad weights/biases to lane-friendly shapes ONCE, outside the hot path."""
    w1, b1, w2, b2, w3, b3 = params
    in_dim, out_dim = w1.shape[0], w3.shape[1]
    return (
        _pad2d(w1, in_dim, LANE),   # (4, 128)
        _pad2d(b1, 1, LANE),        # (1, 128)
        _pad2d(w2, LANE, LANE),     # (128, 128)
        _pad2d(b2, 1, LANE),        # (1, 128)
        _pad2d(w3, LANE, out_dim),  # (128, 3)  -- rows padded, columns stay narrow
        _pad2d(b3, 1, out_dim),     # (1, 3)
    )


@functools.partial(jax.jit, static_argnames=("tb",))
def irisnet_forward(x, padded_params, *, tb=2048):
    """x: [batch, 4] f32.  padded_params: output of prepare_params()."""
    w1p, b1p, w2p, b2p, w3p, b3p = padded_params
    batch, in_dim = x.shape
    out_dim = w3p.shape[1]

    # --- batch tiling: sublane-aligned tile; guarantee grid >= 2 when the batch
    # allows so the "parallel" axis shards across v7x's two TensorCores.
    batch8 = ((batch + 7) // 8) * 8
    tb = max(8, min(tb, batch8))
    if batch8 >= 16 and tb > batch8 // 2:
        tb = max(8, ((batch8 // 2) // 8) * 8)
    padded_batch = pl.cdiv(batch, tb) * tb
    if padded_batch == batch:
        xp = x
    else:
        xp = jnp.zeros((padded_batch, in_dim), x.dtype).at[:batch].set(x)
    grid = (padded_batch // tb,)

    flops = 2 * padded_batch * (in_dim * LANE + LANE * LANE + LANE * out_dim)
    weight_bytes = 4 * (
        w1p.size + b1p.size + w2p.size + b2p.size + w3p.size + b3p.size
    )
    bytes_accessed = padded_batch * (in_dim + out_dim) * 4 + weight_bytes

    resident = lambda shape: pl.BlockSpec(shape, lambda i: (0, 0))  # VMEM-resident

    out = pl.pallas_call(
        irisnet_kernel,
        out_shape=jax.ShapeDtypeStruct((padded_batch, out_dim), jnp.float32),
        grid=grid,
        in_specs=[
            pl.BlockSpec((tb, in_dim), lambda i: (i, 0)),  # x tile (pipelined)
            resident((in_dim, LANE)),                      # w1
            resident((1, LANE)),                           # b1
            resident((LANE, LANE)),                        # w2
            resident((1, LANE)),                           # b2
            resident((LANE, out_dim)),                     # w3 (narrow columns)
            resident((1, out_dim)),                        # b3
        ],
        out_specs=pl.BlockSpec((tb, out_dim), lambda i: (i, 0)),
        compiler_params=pltpu.CompilerParams(
            dimension_semantics=("parallel",),
        ),
        cost_estimate=pl.CostEstimate(
            flops=flops, transcendentals=0, bytes_accessed=bytes_accessed
        ),
    )(xp, w1p, b1p, w2p, b2p, w3p, b3p)

    # Only a row slice (and only when the batch was padded) — no column slice.
    return out if padded_batch == batch else out[:batch]


def init_params(key):
    # Deterministic init mimicking nn.Linear default (uniform in +-1/sqrt(fan_in)).
    dims = [(4, 100), (100, 50), (50, 3)]
    params = []
    for i, (fan_in, fan_out) in enumerate(dims):
        kw, kb = jax.random.split(jax.random.fold_in(key, i))
        bound = 1.0 / (fan_in ** 0.5)
        w = jax.random.uniform(kw, (fan_in, fan_out), jnp.float32, -bound, bound)
        b = jax.random.uniform(kb, (1, fan_out), jnp.float32, -bound, bound)
        params.extend([w, b])
    return tuple(params)


if __name__ == "__main__":
    key = jax.random.PRNGKey(0)
    kx, kp = jax.random.split(key)

    batch = 256  # multi-tile with the grid>=2 cap -> exercises the pipelined grid
    x = jax.random.normal(kx, (batch, 4), dtype=jnp.float32)
    params = init_params(kp)
    padded_params = prepare_params(params)  # padded once, outside the jit hot path

    out = irisnet_forward(x, padded_params)
    out = jax.block_until_ready(out)

    # Reference check in plain JAX (same math, same params, full-precision matmuls).
    w1, b1, w2, b2, w3, b3 = params
    hi = jax.lax.Precision.HIGHEST
    ref = jnp.maximum(jnp.dot(x, w1, precision=hi) + b1, 0.0)
    ref = jnp.maximum(jnp.dot(ref, w2, precision=hi) + b2, 0.0)
    ref = jnp.dot(ref, w3, precision=hi) + b3
    assert out.shape == (batch, 3)
    assert jnp.allclose(out, ref, atol=1e-4, rtol=1e-4)

    print("KERNEL_OK")
</pallas_src>

<mosaic_0001>
module attributes {stable_mosaic.version = 11 : i64} {
  func.func @irisnet_kernel(%arg0: i32, %arg1: memref<128x4xf32, #tpu.memory_space<vmem>>, %arg2: memref<4x128xf32, #tpu.memory_space<vmem>>, %arg3: memref<1x128xf32, #tpu.memory_space<vmem>>, %arg4: memref<128x128xf32, #tpu.memory_space<vmem>>, %arg5: memref<1x128xf32, #tpu.memory_space<vmem>>, %arg6: memref<128x3xf32, #tpu.memory_space<vmem>>, %arg7: memref<1x3xf32, #tpu.memory_space<vmem>>, %arg8: memref<128x3xf32, #tpu.memory_space<vmem>>) attributes {dimension_semantics = [#tpu.dimension_semantics<parallel>], iteration_bounds = array<i64: 2>, scalar_prefetch = 0 : i64, scratch_operands = 0 : i64, tpu.core_type = #tpu.core_type<tc>, window_params = [{transform_indices = @transform_0, window_bounds = array<i64: 128, 4>}, {pipeline_mode = #tpu.pipeline_mode<synchronous>, transform_indices = @transform_1, window_bounds = array<i64: 4, 128>}, {pipeline_mode = #tpu.pipeline_mode<synchronous>, transform_indices = @transform_2, window_bounds = array<i64: 1, 128>}, {pipeline_mode = #tpu.pipeline_mode<synchronous>, transform_indices = @transform_3, window_bounds = array<i64: 128, 128>}, {pipeline_mode = #tpu.pipeline_mode<synchronous>, transform_indices = @transform_4, window_bounds = array<i64: 1, 128>}, {pipeline_mode = #tpu.pipeline_mode<synchronous>, transform_indices = @transform_5, window_bounds = array<i64: 128, 3>}, {pipeline_mode = #tpu.pipeline_mode<synchronous>, transform_indices = @transform_6, window_bounds = array<i64: 1, 3>}, {transform_indices = @transform_7, window_bounds = array<i64: 128, 3>}]} {
    %c0 = arith.constant 0 : index
    %c0_0 = arith.constant 0 : index
    %0 = vector.load %arg1[%c0, %c0_0] : memref<128x4xf32, #tpu.memory_space<vmem>>, vector<128x4xf32>
    %c0_1 = arith.constant 0 : index
    %c0_2 = arith.constant 0 : index
    %1 = vector.load %arg3[%c0_1, %c0_2] : memref<1x128xf32, #tpu.memory_space<vmem>>, vector<1x128xf32>
    %2 = vector.extract_strided_slice %0 {offsets = [0, 0], sizes = [128, 1], strides = [1, 1]} : vector<128x4xf32> to vector<128x1xf32>
    %c0_3 = arith.constant 0 : index
    %c0_4 = arith.constant 0 : index
    %3 = vector.load %arg2[%c0_3, %c0_4] : memref<4x128xf32, #tpu.memory_space<vmem>>, vector<1x128xf32>
    %4 = vector.broadcast %2 : vector<128x1xf32> to vector<128x128xf32>
    %5 = vector.broadcast %3 : vector<1x128xf32> to vector<128x128xf32>
    %6 = arith.mulf %4, %5 : vector<128x128xf32>
    %7 = vector.broadcast %1 : vector<1x128xf32> to vector<128x128xf32>
    %8 = arith.addf %7, %6 : vector<128x128xf32>
    %9 = vector.extract_strided_slice %0 {offsets = [0, 1], sizes = [128, 1], strides = [1, 1]} : vector<128x4xf32> to vector<128x1xf32>
    %c1 = arith.constant 1 : index
    %c0_5 = arith.constant 0 : index
    %10 = vector.load %arg2[%c1, %c0_5] : memref<4x128xf32, #tpu.memory_space<vmem>>, vector<1x128xf32>
    %11 = vector.broadcast %9 : vector<128x1xf32> to vector<128x128xf32>
    %12 = vector.broadcast %10 : vector<1x128xf32> to vector<128x128xf32>
    %13 = arith.mulf %11, %12 : vector<128x128xf32>
    %14 = arith.addf %8, %13 : vector<128x128xf32>
    %15 = vector.extract_strided_slice %0 {offsets = [0, 2], sizes = [128, 1], strides = [1, 1]} : vector<128x4xf32> to vector<128x1xf32>
    %c2 = arith.constant 2 : index
    %c0_6 = arith.constant 0 : index
    %16 = vector.load %arg2[%c2, %c0_6] : memref<4x128xf32, #tpu.memory_space<vmem>>, vector<1x128xf32>
    %17 = vector.broadcast %15 : vector<128x1xf32> to vector<128x128xf32>
    %18 = vector.broadcast %16 : vector<1x128xf32> to vector<128x128xf32>
    %19 = arith.mulf %17, %18 : vector<128x128xf32>
    %20 = arith.addf %14, %19 : vector<128x128xf32>
    %21 = vector.extract_strided_slice %0 {offsets = [0, 3], sizes = [128, 1], strides = [1, 1]} : vector<128x4xf32> to vector<128x1xf32>
    %c3 = arith.constant 3 : index
    %c0_7 = arith.constant 0 : index
    %22 = vector.load %arg2[%c3, %c0_7] : memref<4x128xf32, #tpu.memory_space<vmem>>, vector<1x128xf32>
    %23 = vector.broadcast %21 : vector<128x1xf32> to vector<128x128xf32>
    %24 = vector.broadcast %22 : vector<1x128xf32> to vector<128x128xf32>
    %25 = arith.mulf %23, %24 : vector<128x128xf32>
    %26 = arith.addf %20, %25 : vector<128x128xf32>
    %cst = arith.constant 0.000000e+00 : f32
    %27 = vector.broadcast %cst : f32 to vector<128x128xf32>
    %28 = arith.maximumf %26, %27 : vector<128x128xf32>
    %c0_8 = arith.constant 0 : index
    %c0_9 = arith.constant 0 : index
    %29 = vector.load %arg4[%c0_8, %c0_9] : memref<128x128xf32, #tpu.memory_space<vmem>>, vector<128x128xf32>
    %cst_10 = arith.constant dense<0.000000e+00> : vector<128x128xf32>
    %30 = tpu.matmul %28, %29, %cst_10 {dimension_numbers = #tpu.dot_dimension_numbers<[1], [0], [0], [1], [0, 0, 1, 1], [], []>} : vector<128x128xf32>, vector<128x128xf32>, vector<128x128xf32> -> vector<128x128xf32>
    %c0_11 = arith.constant 0 : index
    %c0_12 = arith.constant 0 : index
    %31 = vector.load %arg5[%c0_11, %c0_12] : memref<1x128xf32, #tpu.memory_space<vmem>>, vector<1x128xf32>
    %32 = vector.broadcast %31 : vector<1x128xf32> to vector<128x128xf32>
    %33 = arith.addf %30, %32 : vector<128x128xf32>
    %cst_13 = arith.constant 0.000000e+00 : f32
    %34 = vector.broadcast %cst_13 : f32 to vector<128x128xf32>
    %35 = arith.maximumf %33, %34 : vector<128x128xf32>
    %c0_14 = arith.constant 0 : index
    %c0_15 = arith.constant 0 : index
    %36 = vector.load %arg6[%c0_14, %c0_15] : memref<128x3xf32, #tpu.memory_space<vmem>>, vector<128x3xf32>
    %cst_16 = arith.constant dense<0.000000e+00> : vector<128x3xf32>
    %37 = tpu.matmul %35, %36, %cst_16 {dimension_numbers = #tpu.dot_dimension_numbers<[1], [0], [0], [1], [0, 0, 1, 1], [], []>} : vector<128x128xf32>, vector<128x3xf32>, vector<128x3xf32> -> vector<128x3xf32>
    %c0_17 = arith.constant 0 : index
    %c0_18 = arith.constant 0 : index
    %38 = vector.load %arg7[%c0_17, %c0_18] : memref<1x3xf32, #tpu.memory_space<vmem>>, vector<1x3xf32>
    %39 = vector.broadcast %38 : vector<1x3xf32> to vector<128x3xf32>
    %40 = arith.addf %37, %39 : vector<128x3xf32>
    %c0_19 = arith.constant 0 : index
    %c0_20 = arith.constant 0 : index
    %41 = vector.load %arg8[%c0_19, %c0_20] : memref<128x3xf32, #tpu.memory_space<vmem>>, vector<128x3xf32>
    tpu.vector_store %arg8[%c0_19, %c0_20], %40 {strides = array<i32>} : memref<128x3xf32, #tpu.memory_space<vmem>>, vector<128x3xf32>,
    return
  }
  func.func @transform_0(%arg0: i32) -> (i32, i32) {
    %c0_i32 = arith.constant 0 : i32
    %c0_i32_0 = arith.constant 0 : i32
    return %arg0, %c0_i32 : i32, i32
  }
  func.func @transform_1(%arg0: i32) -> (i32, i32) {
    %c0_i32 = arith.constant 0 : i32
    %c0_i32_0 = arith.constant 0 : i32
    %c0_i32_1 = arith.constant 0 : i32
    return %c0_i32, %c0_i32_0 : i32, i32
  }
  func.func @transform_2(%arg0: i32) -> (i32, i32) {
    %c0_i32 = arith.constant 0 : i32
    %c0_i32_0 = arith.constant 0 : i32
    %c0_i32_1 = arith.constant 0 : i32
    return %c0_i32, %c0_i32_0 : i32, i32
  }
  func.func @transform_3(%arg0: i32) -> (i32, i32) {
    %c0_i32 = arith.constant 0 : i32
    %c0_i32_0 = arith.constant 0 : i32
    %c0_i32_1 = arith.constant 0 : i32
    return %c0_i32, %c0_i32_0 : i32, i32
  }
  func.func @transform_4(%arg0: i32) -> (i32, i32) {
    %c0_i32 = arith.constant 0 : i32
    %c0_i32_0 = arith.constant 0 : i32
    %c0_i32_1 = arith.constant 0 : i32
    return %c0_i32, %c0_i32_0 : i32, i32
  }
  func.func @transform_5(%arg0: i32) -> (i32, i32) {
    %c0_i32 = arith.constant 0 : i32
    %c0_i32_0 = arith.constant 0 : i32
    %c0_i32_1 = arith.constant 0 : i32
    return %c0_i32, %c0_i32_0 : i32, i32
  }
  func.func @transform_6(%arg0: i32) -> (i32, i32) {
    %c0_i32 = arith.constant 0 : i32
    %c0_i32_0 = arith.constant 0 : i32
    %c0_i32_1 = arith.constant 0 : i32
    return %c0_i32, %c0_i32_0 : i32, i32
  }
  func.func @transform_7(%arg0: i32) -> (i32, i32) {
    %c0_i32 = arith.constant 0 : i32
    %c0_i32_0 = arith.constant 0 : i32
    return %arg0, %c0_i32 : i32, i32
  }
}

</mosaic_0001>

<bundles_post_ra>
// kernel: irisnet_forward.1
= control target key start
LH: loop header
LB: loop body
LE: loop exit
PB: predicated region body
PF: predicated region fallthrough
CT: control target
= control target key end

     0   :  { %s1523_s24 = smov 0   ;;  %s1916_s0 = inlined_call_operand.vmem [shape: f32[256,4], index: 0, kind: input, shape index: {}]   ;;  %s1917_s1 = inlined_call_operand.vmem [shape: f32[4,128], index: 1, kind: input, shape index: {}]   ;;  %s1918_s2 = inlined_call_operand.vmem [shape: f32[1,128], index: 2, kind: input, shape index: {}]   ;;  %s1919_s3 = inlined_call_operand.vmem [shape: f32[128,128], index: 3, kind: input, shape index: {}]   ;;  %s1920_s4 = inlined_call_operand.vmem [shape: f32[1,128], index: 4, kind: input, shape index: {}]   ;;  %s1921_s5 = inlined_call_operand.vmem [shape: f32[128,3], index: 5, kind: input, shape index: {}]   ;;  %s1922_s6 = inlined_call_operand.vmem [shape: f32[1,3], index: 6, kind: input, shape index: {}]   ;;  %s1923_s7 = inlined_call_operand.vmem [shape: f32[256,3], index: 7, kind: output, shape index: {}]  }
   0x1 LB: > { %s1166_s25 = sadd.s32 4294967295, %s1477_s24   ;;  %p1170_p0 = scmp.ge.s32.totalorder %s1477_s24, 1  ;;  %s1477_s24 = sphi %s1523_s24, %s17_s24  }
   0x2   : > { %p238_p1 = scmp.lt.s32.totalorder %s1477_s24, 3 }
   0x4   : > { %p239_p2 = pnand %p1170_p0, %p238_p1 }
   0x5   : > { %s1171_s26 = sshll.u32 (!%p239_p2), %s1166_s25, 4  ;;  %v1479_v0 = vmov (!%p239_p2), 3   ;;  %v1480_v1 = vmov (!%p239_p2), 1   ;;  %v741_v2 = vld [vmem:[%s1919_s3] sm:$0xff] (!%p239_p2)  ;;  %v742_v3 = vld [vmem:[%s1919_s3 + $0x8] sm:$0xff] (!%p239_p2)  ;;  %v743_v8 = vld [vmem:[%s1919_s3 + $0x10] sm:$0xff] (!%p239_p2) }
   0x6   : > { %242 = sbr.rel (%p239_p2) target bundleno = 774 (0x306), region = 48  ;;  %1440 = vset.pattern.permute.xlu0 (!%p239_p2), %v1479_v0  ;;  %1436 = vset.pattern.permute.xlu1 (!%p239_p2), %v1480_v1  ;;  %p271_p3 = scmp.lt.s32.totalorder (!%p239_p2), %s1171_s26, 31  ;;  %v1360_v6 = vpack.c.bf16 (!%p239_p2), %v742_v3, %v741_v2  ;;  %v744_v9 = vld [vmem:[%s1919_s3 + $0x18] sm:$0xff] (!%p239_p2)  ;;  %v745_v12 = vld [vmem:[%s1919_s3 + $0x20] sm:$0xff] (!%p239_p2)  ;;  %v746_v13 = vld [vmem:[%s1919_s3 + $0x28] sm:$0xff] (!%p239_p2)  ;;  %v1481_v15 = vmov (!%p239_p2), 2  }
   0x7   : > { %v1364_v11 = vpack.c.bf16 (!%p239_p2), %v744_v9, %v743_v8  ;;  %v1368_v14 = vpack.c.bf16 (!%p239_p2), %v746_v13, %v745_v12  ;;  %v747_v17 = vld [vmem:[%s1919_s3 + $0x30] sm:$0xff] (!%p239_p2)  ;;  %v748_v18 = vld [vmem:[%s1919_s3 + $0x38] sm:$0xff] (!%p239_p2)  ;;  %v749_v20 = vld [vmem:[%s1919_s3 + $0x40] sm:$0xff] (!%p239_p2)  ;;  %v1482_v22 = vmov (!%p239_p2), 0   ;;  %vm1093_vm0 = vcmask (!%p239_p2), 23552  }
   0x8   : > { %1361 = vmatprep.subr.bf16.mxu0 (!%p239_p2), %v1360_v6  ;;  %v1372_v19 = vpack.c.bf16 (!%p239_p2), %v748_v18, %v747_v17  ;;  %v750_v21 = vld [vmem:[%s1919_s3 + $0x48] sm:$0xff] (!%p239_p2)  ;;  %v751_v24 = vld [vmem:[%s1919_s3 + $0x50] sm:$0xff] (!%p239_p2)  ;;  %v752_v25 = vld [vmem:[%s1919_s3 + $0x58] sm:$0xff] (!%p239_p2) }
   0x9   : > { %1363 = vmatpush3.bf16.msra.mxu0 (!%p239_p2), %v1360_v6  ;;  %v1376_v23 = vpack.c.bf16 (!%p239_p2), %v750_v21, %v749_v20  ;;  %v1380_v26 = vpack.c.bf16 (!%p239_p2), %v752_v25, %v751_v24  ;;  %v753_v28 = vld [vmem:[%s1919_s3 + $0x60] sm:$0xff] (!%p239_p2)  ;;  %v754_v29 = vld [vmem:[%s1919_s3 + $0x68] sm:$0xff] (!%p239_p2)  ;;  %v755_v32 = vld [vmem:[%s1919_s3 + $0x70] sm:$0xff] (!%p239_p2) }
   0xa   : > { %1365 = vmatprep.subr.bf16.mxu0 (!%p239_p2), %v1364_v11  ;;  %v1384_v30 = vpack.c.bf16 (!%p239_p2), %v754_v29, %v753_v28  ;;  %v756_v33 = vld [vmem:[%s1919_s3 + $0x78] sm:$0xff] (!%p239_p2)  ;;  %v1678_v51 = vld [vmem:[%s1917_s1] ss:$0 sm:$0xff] (!%p239_p2)  ;;  %v1683_v52 = vld [vmem:[%s1917_s1 + $0x1] ss:$0 sm:$0xff] (!%p239_p2) }
   0xb   : > { %v1388_v34 = vpack.c.bf16 (!%p239_p2), %v756_v33, %v755_v32  ;;  %v1688_v53 = vld [vmem:[%s1918_s2] ss:$0 sm:$0xff] (!%p239_p2)  ;;  %v1694_v57 = vld [vmem:[%s1917_s1 + $0x2] ss:$0 sm:$0xff] (!%p239_p2)  ;;  %v1702_v60 = vld [vmem:[%s1917_s1 + $0x3] ss:$0 sm:$0xff] (!%p239_p2) }
   0xd   : > { %s1925_s26 = smov (!%p271_p3, %s1171_s26), 31  ;;  %1367 = vmatpush3.bf16.msra.mxu0 %v1364_v11 }
   0xe   : > { %s1172_s27 = sshll.u32 %s1925_s26, 3  ;;  %1369 = vmatprep.subr.bf16.mxu0 %v1368_v14 }
   0xf   : > { %s1541_s30 = scalar_lea.vmem %s1916_s0, %s1172_s27  ;;  %s1879_s10 = scalar_lea.vmem %s1923_s7, %s1172_s27 }
  0x10   : > { %v283_v4 = vld [vmem:[%s1541_s30 + $0x8] sm:$0xff]  ;;  %v282_v5 = vld [vmem:[%s1541_s30] sm:$0xff]  ;;  %v1552_v7 = vld [vmem:[%s1541_s30 + $0x10] sm:$0xff] }
  0x11   : > { %630 = vperm.xlu0 %1440, %v283_v4   ;;  %424 = vperm.xlu1 %1436, %v282_v5   ;;  %v1562_v10 = vld [vmem:[%s1541_s30 + $0x38] sm:$0xff]  ;;  %v1573_v16 = vld [vmem:[%s1541_s30 + $0x40] sm:$0xff]  ;;  %v287_v35 = vld [vmem:[%s1541_s30 + $0x28] sm:$0xff] }
  0x12   : > { %1371 = vmatpush3.bf16.msra.mxu0 %v1368_v14  ;;  %v285_v27 = vld [vmem:[%s1541_s30 + $0x18] sm:$0xff]  ;;  %v286_v31 = vld [vmem:[%s1541_s30 + $0x20] sm:$0xff]  ;;  %v288_v36 = vld [vmem:[%s1541_s30 + $0x30] sm:$0xff] }
  0x13   : > { %1373 = vmatprep.subr.bf16.mxu0 %v1372_v19  ;;  %v1618_v37 = vld [vmem:[%s1541_s30 + $0x58] sm:$0xff]  ;;  %v1623_v38 = vld [vmem:[%s1541_s30 + $0x60] sm:$0xff]  ;;  %v1640_v39 = vld [vmem:[%s1541_s30 + $0x68] sm:$0xff] }
  0x14   : > { %v291_v40 = vld [vmem:[%s1541_s30 + $0x48] sm:$0xff]  ;;  %v1647_v41 = vld [vmem:[%s1541_s30 + $0x70] sm:$0xff]  ;;  %v297_v18 = vld [vmem:[%s1541_s30 + $0x78] sm:$0xff] }
  0x15   : > { %634 = vperm.xlu0 %1440, %v1552_v7   ;;  %428 = vperm.xlu1 %1436, %v283_v4   ;;  %v292_v42 = vld [vmem:[%s1541_s30 + $0x50] sm:$0xff] }
  0x16   : > { %1375 = vmatpush3.bf16.msra.mxu0 %v1372_v19 }
  0x17   : > { %1377 = vmatprep.subr.bf16.mxu0 %v1376_v23 }
  0x19   : > { %654 = vperm.xlu0 %1440, %v1562_v10   ;;  %1437 = vset.pattern.permute.xlu1 %v1481_v15 }
  0x1a   : > { %525 = vperm.xlu1 %1437, %v282_v5   ;;  %1379 = vmatpush3.bf16.msra.mxu0 %v1376_v23 }
  0x1b   : > { %1381 = vmatprep.subr.bf16.mxu0 %v1380_v26 }
  0x1d   : > { %658 = vperm.xlu0 %1440, %v1573_v16  }
  0x1e   : > { %529 = vperm.xlu1 %1437, %v283_v4   ;;  %1383 = vmatpush3.bf16.msra.mxu0 %v1380_v26 }
  0x1f   : > { %1385 = vmatprep.subr.bf16.mxu0 %v1384_v30 }
  0x21   : > { %1456 = vset.pattern.permute.xlu0 %v1482_v22 }
  0x22   : > { %302 = vperm.xlu0 %1456, %v282_v5   ;;  %1438 = vset.pattern.permute.xlu1 %v1479_v0 }
  0x23   : > { %626 = vperm.xlu1 %1438, %v282_v5   ;;  %1387 = vmatpush3.bf16.msra.mxu0 %v1384_v30 }
  0x24   : > { %1389 = vmatprep.subr.bf16.mxu0 %v1388_v34 }
  0x26   : > { %307 = vperm.xlu0 %1456, %v283_v4  }
  0x27   : > { %1439 = vset.pattern.permute.xlu1 %v1480_v1  ;;  %1391 = vmatpush3.bf16.msra.mxu0 %v1388_v34 }
  0x28   : > { %436 = vperm.xlu1 %1439, %v285_v27  }
  0x2a   : > { %312 = vperm.xlu0 %1456, %v1552_v7  }
  0x2c   : > { %1441 = vset.pattern.permute.xlu1 %v1482_v22 }
  0x2d   : > { %322 = vperm.xlu1 %1441, %v286_v31  }
  0x2e   : > { %317 = vperm.xlu0 %1456, %v285_v27  }
  0x31   : > { %1442 = vset.pattern.permute.xlu1 %v1481_v15 }
  0x32   : > { %327 = vperm.xlu0 %1456, %v287_v35   ;;  %533 = vperm.xlu1 %1442, %v1552_v7  }
  0x36   : > { %332 = vperm.xlu0 %1456, %v288_v36   ;;  %537 = vperm.xlu1 %1442, %v285_v27  }
  0x3a   : > { %357 = vperm.xlu0 %1456, %v1618_v37   ;;  %1443 = vset.pattern.permute.xlu1 %v1480_v1 }
  0x3b   : > { %440 = vperm.xlu1 %1443, %v286_v31  }
  0x3e   : > { %362 = vperm.xlu0 %1456, %v1623_v38  }
  0x3f   : > { %444 = vperm.xlu1 %1443, %v287_v35  }
  0x42   : > { %1458 = vset.pattern.permute.xlu0 %v1481_v15 }
  0x43   : > { %545 = vperm.xlu0 %1458, %v287_v35   ;;  %1444 = vset.pattern.permute.xlu1 %v1479_v0 }
  0x44   : > { %638 = vperm.xlu1 %1444, %v285_v27  }
  0x47   : > { %549 = vperm.xlu0 %1458, %v288_v36  }
  0x48   : > { %1445 = vset.pattern.permute.xlu1 %v1481_v15 }
  0x49   : > { %541 = vperm.xlu1 %1445, %v286_v31  }
  0x4b   : > { %569 = vperm.xlu0 %1458, %v1618_v37  }
  0x4d   : > { %1446 = vset.pattern.permute.xlu1 %v1482_v22 }
  0x4e   : > { %337 = vperm.xlu1 %1446, %v1562_v10  }
  0x4f   : > { %573 = vperm.xlu0 %1458, %v1623_v38  }
  0x52   : > { %1447 = vset.pattern.permute.xlu1 %v1480_v1 }
  0x53   : > { %1464 = vset.pattern.permute.xlu0 %v1480_v1  ;;  %448 = vperm.xlu1 %1447, %v288_v36  }
  0x54   : > { %432 = vperm.xlu0 %1464, %v1552_v7  }
  0x57   : > { %1448 = vset.pattern.permute.xlu1 %v1479_v0 }
  0x58   : > { %452 = vperm.xlu0 %1464, %v1562_v10   ;;  %642 = vperm.xlu1 %1448, %v286_v31  }
  0x5c   : > { %646 = vperm.xlu1 %1448, %v287_v35   ;;  %456 = vperm.xlu0 %1464, %v1573_v16  }
  0x60   : > { %1449 = vset.pattern.permute.xlu1 %v1482_v22  ;;  %476 = vperm.xlu0 %1464, %v1640_v39  }
  0x61   : > { %342 = vperm.xlu1 %1449, %v1573_v16  }
  0x64   : > { %480 = vperm.xlu0 %1464, %v1647_v41  }
  0x65   : > { %347 = vperm.xlu1 %1449, %v291_v40  }
  0x68   : > { %1468 = vset.pattern.permute.xlu0 %v1479_v0 }
  0x69   : > { %1450 = vset.pattern.permute.xlu1 %v1481_v15  ;;  %678 = vperm.xlu0 %1468, %v1640_v39  }
  0x6a   : > { %553 = vperm.xlu1 %1450, %v1562_v10  }
  0x6d   : > { %682 = vperm.xlu0 %1468, %v1647_v41  }
  0x6e   : > { %1451 = vset.pattern.permute.xlu1 %v1479_v0 }
  0x6f   : > { %650 = vperm.xlu1 %1451, %v288_v36  }
  0x73   : > { %1452 = vset.pattern.permute.xlu1 %v1480_v1 }
  0x74   : > { %460 = vperm.xlu1 %1452, %v291_v40  }
  0x78   : > { %1453 = vset.pattern.permute.xlu1 %v1482_v22 }
  0x79   : > { %352 = vperm.xlu1 %1453, %v292_v42  }
  0x7d   : > { %1454 = vset.pattern.permute.xlu1 %v1481_v15 }
  0x7e   : > { %557 = vperm.xlu1 %1454, %v1573_v16  }
  0x82   : > { %561 = vperm.xlu1 %1454, %v291_v40  }
  0x86   : > { %1455 = vset.pattern.permute.xlu1 %v1480_v1 }
  0x87   : > { %464 = vperm.xlu1 %1455, %v292_v42  }
  0x8b   : > { %468 = vperm.xlu1 %1455, %v1618_v37  }
  0x8f   : > { %1457 = vset.pattern.permute.xlu1 %v1479_v0 }
  0x90   : > { %662 = vperm.xlu1 %1457, %v291_v40   ;;  %v425_v43 = vpop.permute.xlu1 %424  ;;  %v631_v44 = vpop.permute.xlu0 %630 }
  0x91   : > { %v491_v58 = vmul.f32 %v1683_v52, %v425_v43  ;;  %v694_v9 = vmul.f32 %v1702_v60, %v631_v44 }
  0x94   : > { %1459 = vset.pattern.permute.xlu1 %v1481_v15  ;;  %v429_v45 = vpop.permute.xlu1 %428  ;;  %v1665_v46 = vpop.permute.xlu0 %634 }
  0x95   : > { %565 = vperm.xlu1 %1459, %v292_v42   ;;  %v492_v4 = vmul.f32 %v1683_v52, %v429_v45 }
  0x98   : > { %v1667_v47 = vpop.permute.xlu0 %654 }
  0x99   : > { %1460 = vset.pattern.permute.xlu1 %v1482_v22  ;;  %v526_v48 = vpop.permute.xlu1 %525 }
  0x9a   : > { %367 = vperm.xlu1 %1460, %v1640_v39   ;;  %v592_v62 = vmul.f32 %v1694_v57, %v526_v48 }
  0x9c   : > { %v1671_v49 = vpop.permute.xlu0 %658 }
  0x9d   : > { %v530_v50 = vpop.permute.xlu1 %529 }
  0x9e   : > { %1461 = vset.pattern.permute.xlu1 %v1480_v1  ;;  %v593_v10 = vmul.f32 %v1694_v57, %v530_v50 }
  0x9f   : > { %472 = vperm.xlu1 %1461, %v1623_v38  }
  0xa1   : > { %v303_v54 = vpop.permute.xlu0 %302 }
  0xa2   : > { %v384_v55 = vmul.f32 %v1678_v51, %v303_v54  ;;  %v627_v56 = vpop.permute.xlu1 %626 }
  0xa3   : > { %1462 = vset.pattern.permute.xlu1 %v1479_v0  ;;  %v693_v5 = vmul.f32 %v1702_v60, %v627_v56  ;;  %v927_v56 = vld [vmem:[%s1921_s5 + $0x10] sm:$0xff] }
  0xa4   : > { %v406_v59 = vadd.f32 %v1688_v53, %v384_v55  ;;  %666 = vperm.xlu1 %1462, %v292_v42   ;;  %v925_v55 = vld [vmem:[%s1921_s5] sm:$0xff] }
  0xa5   : > { %v308_v61 = vpop.permute.xlu0 %307 }
  0xa6   : > { %v385_v63 = vmul.f32 %v1678_v51, %v308_v61  ;;  %v507_v2 = vadd.f32 %v491_v58, %v406_v59 }
  0xa7   : > { %v437_v3 = vpop.permute.xlu1 %436 }
  0xa8   : > { %v407_v6 = vadd.f32 %v1688_v53, %v385_v63  ;;  %670 = vperm.xlu1 %1462, %v1618_v37   ;;  %v608_v7 = vadd.f32 %v592_v62, %v507_v2  ;;  %v494_v42 = vmul.f32 %v1683_v52, %v437_v3  ;;  %v928_v63 = vld [vmem:[%s1921_s5 + $0x18] sm:$0xff] }
  0xa9   : > { %v313_v8 = vpop.permute.xlu0 %312 }
  0xaa   : > { %v508_v11 = vadd.f32 %v492_v4, %v407_v6  ;;  %v709_v12 = vadd.f32 %v693_v5, %v608_v7  ;;  %v1396_v5 = vpack.c.bf16 %v928_v63, %v927_v56  ;;  %v929_v6 = vld [vmem:[%s1921_s5 + $0x20] sm:$0xff]  ;;  %v930_v7 = vld [vmem:[%s1921_s5 + $0x28] sm:$0xff] }
  0xac   : > { %1463 = vset.pattern.permute.xlu1 %v1482_v22  ;;  %v323_v13 = vpop.permute.xlu1 %322  ;;  %v725_v14 = vmax.f32 %v709_v12, 0.0  ;;  %v609_v16 = vadd.f32 %v593_v10, %v508_v11 }
  0xad   : > { %v318_v17 = vpop.permute.xlu0 %317  ;;  %372 = vperm.xlu1 %1463, %v1647_v41  }
  0xae   : > { %1280 = vmatprep.mubr.f32.mxu0 %v725_v14  ;;  %v710_v19 = vadd.f32 %v694_v9, %v609_v16  ;;  %v387_v34 = vmul.f32 %v1678_v51, %v318_v17  ;;  %v1400_v16 = vpack.c.bf16 %v930_v7, %v929_v6 }
  0xb0   : > { %v726_v20 = vmax.f32 %v710_v19, 0.0  ;;  %v409_v37 = vadd.f32 %v1688_v53, %v387_v34 }
  0xb1   : > { %377 = vperm.xlu1 %1463, %v297_v18   ;;  %v534_v21 = vpop.permute.xlu1 %533  ;;  %v328_v23 = vpop.permute.xlu0 %327 }
  0xb2   : > { %1281 = vmatmul.mubr.f32.vlgmr.msra.gmra.mrb[0].mxu0 %v726_v20  ;;  %v594_v48 = vmul.f32 %v1694_v57, %v534_v21  ;;  %v510_v59 = vadd.f32 %v494_v42, %v409_v37  ;;  %v931_v20 = vld [vmem:[%s1921_s5 + $0x30] sm:$0xff]  ;;  %v932_v21 = vld [vmem:[%s1921_s5 + $0x38] sm:$0xff] }
  0xb5   : > { %1465 = vset.pattern.permute.xlu1 %v1481_v15  ;;  %v538_v24 = vpop.permute.xlu1 %537  ;;  %v1716_v25 = vpop.permute.xlu0 %332 }
  0xb6   : > { %577 = vperm.xlu1 %1465, %v1640_v39   ;;  %v595_v43 = vmul.f32 %v1694_v57, %v538_v24  ;;  %v390_v42 = vmul.f32 %v1678_v51, %v1716_v25 }
  0xb8   : > { %v412_v25 = vadd.f32 %v1688_v53, %v390_v42 }
  0xb9   : > { %v1719_v22 = vpop.permute.xlu0 %357 }
  0xba   : > { %1466 = vset.pattern.permute.xlu1 %v1479_v0  ;;  %v441_v26 = vpop.permute.xlu1 %440 }
  0xbb   : > { %674 = vperm.xlu1 %1466, %v1623_v38   ;;  %v389_v38 = vmul.f32 %v1678_v51, %v328_v23  ;;  %v495_v40 = vmul.f32 %v1683_v52, %v441_v26 }
  0xbd   : > { %v1723_v27 = vpop.permute.xlu0 %362  ;;  %v411_v58 = vadd.f32 %v1688_v53, %v389_v38 }
  0xbe   : > { %v445_v28 = vpop.permute.xlu1 %444 }
  0xbf   : > { %1467 = vset.pattern.permute.xlu1 %v1480_v1  ;;  %v386_v1 = vmul.f32 %v1678_v51, %v313_v8  ;;  %v496_v3 = vmul.f32 %v1683_v52, %v445_v28  ;;  %v611_v8 = vadd.f32 %v595_v43, %v510_v59 }
  0xc0   : > { %484 = vperm.xlu1 %1467, %v297_v18  }
  0xc1   : > { %v408_v39 = vadd.f32 %v1688_v53, %v386_v1  ;;  %v512_v17 = vadd.f32 %v496_v3, %v411_v58  ;;  %v933_v1 = vld [vmem:[%s1921_s5 + $0x40] sm:$0xff] }
  0xc2   : > { %v546_v29 = vpop.permute.xlu0 %545 }
  0xc3   : > { %v639_v30 = vpop.permute.xlu1 %638  ;;  %v597_v10 = vmul.f32 %v1694_v57, %v546_v29 }
  0xc4   : > { %1469 = vset.pattern.permute.xlu1 %v1481_v15  ;;  %v388_v15 = vmul.f32 %v1678_v51, %v323_v13  ;;  %v696_v61 = vmul.f32 %v1702_v60, %v639_v30  ;;  %v1404_v30 = vpack.c.bf16 %v932_v21, %v931_v20 }
  0xc5   : > { %581 = vperm.xlu1 %1469, %v1647_v41   ;;  %v613_v24 = vadd.f32 %v597_v10, %v512_v17 }
  0xc6   : > { %v1728_v31 = vpop.permute.xlu0 %549  ;;  %v410_v45 = vadd.f32 %v1688_v53, %v388_v15  ;;  %v712_v14 = vadd.f32 %v696_v61, %v611_v8  ;;  %v934_v15 = vld [vmem:[%s1921_s5 + $0x48] sm:$0xff] }
  0xc8   : > { %v542_v32 = vpop.permute.xlu1 %541  ;;  %v511_v2 = vadd.f32 %v495_v40, %v410_v45  ;;  %v728_v29 = vmax.f32 %v712_v14, 0.0  ;;  %v935_v40 = vld [vmem:[%s1921_s5 + $0x50] sm:$0xff] }
  0xc9   : > { %585 = vperm.xlu1 %1469, %v297_v18   ;;  %v596_v50 = vmul.f32 %v1694_v57, %v542_v32 }
  0xca   : > { %v1730_v33 = vpop.permute.xlu0 %569 }
  0xcb   : > { %v612_v11 = vadd.f32 %v596_v50, %v511_v2  ;;  %v700_v2 = vmul.f32 %v1702_v60, %v1667_v47 }
  0xcd   : > { %1470 = vset.pattern.permute.xlu1 %v1479_v0  ;;  %v1734_v35 = vpop.permute.xlu1 %337  ;;  %v695_v0 = vmul.f32 %v1702_v60, %v1665_v46  ;;  %v926_v46 = vld [vmem:[%s1921_s5 + $0x8] sm:$0xff] }
  0xce   : > { %686 = vperm.xlu1 %1470, %v297_v18   ;;  %v1737_v36 = vpop.permute.xlu0 %573  ;;  %v1392_v62 = vpack.c.bf16 %v926_v46, %v925_v55  ;;  %v938_v55 = vld [vmem:[%s1921_s5 + $0x68] sm:$0xff] }
  0xd0   : > { %1393 = vmatprep.subr.bf16.mxu1 %v1392_v62 }
  0xd1   : > { %1395 = vmatpush3.bf16.msra.mxu1 %v1392_v62  ;;  %v598_v62 = vmul.f32 %v1694_v57, %v1728_v31 }
  0xd2   : > { %v1744_v41 = vpop.permute.xlu1 %448  ;;  %1397 = vmatprep.subr.bf16.mxu1 %v1396_v5 }
  0xd3   : > { %v433_v44 = vpop.permute.xlu0 %432  ;;  %v497_v46 = vmul.f32 %v1683_v52, %v1744_v41 }
  0xd4   : > { %v493_v54 = vmul.f32 %v1683_v52, %v433_v44  ;;  %v391_v44 = vmul.f32 %v1678_v51, %v1734_v35 }
  0xd5   : > { %1399 = vmatpush3.bf16.msra.mxu1 %v1396_v5  ;;  %v513_v63 = vadd.f32 %v497_v46, %v412_v25 }
  0xd6   : > { %v509_v4 = vadd.f32 %v493_v54, %v408_v39  ;;  %1401 = vmatprep.subr.bf16.mxu1 %v1400_v16  ;;  %v1408_v39 = vpack.c.bf16 %v934_v15, %v933_v1  ;;  %v937_v54 = vld [vmem:[%s1921_s5 + $0x60] sm:$0xff]  ;;  %v413_v35 = vadd.f32 %v1688_v53, %v391_v44  ;;  %v603_v15 = vmul.f32 %v1694_v57, %v1730_v33 }
  0xd7   : > { %v643_v9 = vpop.permute.xlu1 %642  ;;  %v453_v43 = vpop.permute.xlu0 %452  ;;  %v1416_v58 = vpack.c.bf16 %v938_v55, %v937_v54  ;;  %v396_v33 = vmul.f32 %v1678_v51, %v1723_v27 }
  0xd8   : > { %v610_v12 = vadd.f32 %v594_v48, %v509_v4  ;;  %v697_v13 = vmul.f32 %v1702_v60, %v643_v9  ;;  %v498_v50 = vmul.f32 %v1683_v52, %v453_v43  ;;  %v614_v4 = vadd.f32 %v598_v62, %v513_v63 }
  0xd9   : > { %1403 = vmatpush3.bf16.msra.mxu1 %v1400_v16 }
  0xda   : > { %v713_v18 = vadd.f32 %v697_v13, %v612_v11  ;;  %v711_v19 = vadd.f32 %v695_v0, %v610_v12  ;;  %1405 = vmatprep.subr.bf16.mxu1 %v1404_v30  ;;  %v936_v0 = vld [vmem:[%s1921_s5 + $0x58] sm:$0xff]  ;;  %v514_v59 = vadd.f32 %v498_v50, %v413_v35  ;;  %v418_v35 = vadd.f32 %v1688_v53, %v396_v33 }
  0xdb   : > { %v647_v23 = vpop.permute.xlu1 %646  ;;  %v1412_v48 = vpack.c.bf16 %v936_v0, %v935_v40  ;;  %v457_v11 = vpop.permute.xlu0 %456 }
  0xdc   : > { %v698_v26 = vmul.f32 %v1702_v60, %v647_v23  ;;  %v727_v28 = vmax.f32 %v711_v19, 0.0  ;;  %v729_v32 = vmax.f32 %v713_v18, 0.0  ;;  %v499_v13 = vmul.f32 %v1683_v52, %v457_v11 }
  0xdd   : > { %1407 = vmatpush3.bf16.msra.mxu1 %v1404_v30  ;;  %v701_v18 = vmul.f32 %v1702_v60, %v1671_v49  ;;  %v395_v30 = vmul.f32 %v1678_v51, %v1719_v22 }
  0xde   : > { %v714_v34 = vadd.f32 %v698_v26, %v613_v24  ;;  %1283 = vmatprep.mubr.f32.mxu0 %v727_v28  ;;  %1409 = vmatprep.subr.bf16.mxu1 %v1408_v39  ;;  %v939_v24 = vld [vmem:[%s1921_s5 + $0x70] sm:$0xff]  ;;  %v940_v26 = vld [vmem:[%s1921_s5 + $0x78] sm:$0xff] }
  0xdf   : > { %1284 = vmatmul.mubr.f32.gmra.mrb[2].mxu0 %v728_v29  ;;  %v1420_v29 = vpack.c.bf16 %v940_v26, %v939_v24  ;;  %v417_v1 = vadd.f32 %v1688_v53, %v395_v30 }
  0xe0   : > { %v730_v37 = vmax.f32 %v714_v34, 0.0  ;;  %1286 = vmatprep.mubr.f32.mxu0 %v729_v32  ;;  %v343_v38 = vpop.permute.xlu1 %342 }
  0xe1   : > { %1411 = vmatpush3.bf16.msra.mxu1 %v1408_v39  ;;  %v392_v31 = vmul.f32 %v1678_v51, %v343_v38 }
  0xe2   : > { %1413 = vmatprep.subr.bf16.mxu1 %v1412_v48 }
  0xe3   : > { %1287 = vmatmul.mubr.f32.gmra.mrb[4].mxu0 %v730_v37  ;;  %v414_v47 = vadd.f32 %v1688_v53, %v392_v31 }
  0xe4   : > { %v348_v45 = vpop.permute.xlu1 %347 }
  0xe5   : > { %1415 = vmatpush3.bf16.msra.mxu1 %v1412_v48  ;;  %v515_v16 = vadd.f32 %v499_v13, %v414_v47  ;;  %v393_v49 = vmul.f32 %v1678_v51, %v348_v45 }
  0xe6   : > { %1417 = vmatprep.subr.bf16.mxu1 %v1416_v58 }
  0xe7   : > { %v415_v38 = vadd.f32 %v1688_v53, %v393_v49 }
  0xe9   : > { %v554_v56 = vpop.permute.xlu1 %553  ;;  %1419 = vmatpush3.bf16.msra.mxu1 %v1416_v58 }
  0xea   : > { %v599_v61 = vmul.f32 %v1694_v57, %v554_v56  ;;  %1421 = vmatprep.subr.bf16.mxu1 %v1420_v29  ;;  %v604_v56 = vmul.f32 %v1694_v57, %v1737_v36 }
  0xec   : > { %v615_v3 = vadd.f32 %v599_v61, %v514_v59 }
  0xed   : > { %1423 = vmatpush3.bf16.msra.mxu1 %v1420_v29 }
  0xee   : > { %v651_v41 = vpop.permute.xlu1 %650  ;;  %v716_v6 = vadd.f32 %v700_v2, %v615_v3 }
  0xef   : > { %v699_v5 = vmul.f32 %v1702_v60, %v651_v41 }
  0xf0   : > { %v732_v10 = vmax.f32 %v716_v6, 0.0 }
  0xf1   : > { %v715_v7 = vadd.f32 %v699_v5, %v614_v4 }
  0xf3   : > { %v731_v8 = vmax.f32 %v715_v7, 0.0  ;;  %v461_v9 = vpop.permute.xlu1 %460 }
  0xf4   : > { %v500_v32 = vmul.f32 %v1683_v52, %v461_v9 }
  0xf5   : > { %1289 = vmatprep.mubr.f32.mxu0 %v731_v8 }
  0xf6   : > { %1290 = vmatmul.mubr.f32.gmra.mrb[6].mxu0 %v732_v10  ;;  %v516_v22 = vadd.f32 %v500_v32, %v415_v38  ;;  %v477_v10 = vpop.permute.xlu0 %476 }
  0xf7   : > { %v504_v13 = vmul.f32 %v1683_v52, %v477_v10 }
  0xf8   : > { %v353_v12 = vpop.permute.xlu1 %352 }
  0xf9   : > { %v394_v55 = vmul.f32 %v1678_v51, %v353_v12 }
  0xfa   : > { %v481_v12 = vpop.permute.xlu0 %480 }
  0xfb   : > { %v416_v59 = vadd.f32 %v1688_v53, %v394_v55 }
  0xfd   : > { %v558_v14 = vpop.permute.xlu1 %557 }
  0xfe   : > { %v600_v17 = vmul.f32 %v1694_v57, %v558_v14 }
 0x100   : > { %v616_v19 = vadd.f32 %v600_v17, %v515_v16  ;;  %v679_v16 = vpop.permute.xlu0 %678 }
 0x101   : > { %v562_v20 = vpop.permute.xlu1 %561 }
 0x102   : > { %v717_v21 = vadd.f32 %v701_v18, %v616_v19  ;;  %v601_v39 = vmul.f32 %v1694_v57, %v562_v20  ;;  %v706_v20 = vmul.f32 %v1702_v60, %v679_v16 }
 0x104   : > { %v733_v23 = vmax.f32 %v717_v21, 0.0  ;;  %v617_v43 = vadd.f32 %v601_v39, %v516_v22 }
 0x106   : > { %1292 = vmatprep.mubr.f32.mxu0 %v733_v23  ;;  %v465_v28 = vpop.permute.xlu1 %464 }
 0x107   : > { %v501_v25 = vmul.f32 %v1683_v52, %v465_v28 }
 0x109   : > { %v517_v63 = vadd.f32 %v501_v25, %v416_v59 }
 0x10a   : > { %v469_v34 = vpop.permute.xlu1 %468 }
 0x10b   : > { %v502_v37 = vmul.f32 %v1683_v52, %v469_v34  ;;  %v505_v34 = vmul.f32 %v1683_v52, %v481_v12 }
 0x10d   : > { %v518_v40 = vadd.f32 %v502_v37, %v417_v1  ;;  %v683_v1 = vpop.permute.xlu0 %682 }
 0x10e   : > { %v707_v39 = vmul.f32 %v1702_v60, %v683_v1 }
 0x10f   : > { %v663_v0 = vpop.permute.xlu1 %662  ;;  %v619_v42 = vadd.f32 %v603_v15, %v518_v40 }
 0x110   : > { %v702_v44 = vmul.f32 %v1702_v60, %v663_v0 }
 0x112   : > { %v718_v45 = vadd.f32 %v702_v44, %v617_v43 }
 0x114   : > { %v734_v48 = vmax.f32 %v718_v45, 0.0  ;;  %v566_v50 = vpop.permute.xlu1 %565 }
 0x115   : > { %v602_v61 = vmul.f32 %v1694_v57, %v566_v50 }
 0x116   : > { %1293 = vmatmul.mubr.f32.gmra.mrb[8].mxu0 %v734_v48 }
 0x117   : > { %v618_v3 = vadd.f32 %v602_v61, %v517_v63 }
 0x119   : > { %v368_v54 = vpop.permute.xlu1 %367 }
 0x11a   : > { %v397_v31 = vmul.f32 %v1678_v51, %v368_v54 }
 0x11c   : > { %v419_v47 = vadd.f32 %v1688_v53, %v397_v31 }
 0x11e   : > { %v473_v46 = vpop.permute.xlu1 %472  ;;  %v520_v17 = vadd.f32 %v504_v13, %v419_v47 }
 0x11f   : > { %v503_v58 = vmul.f32 %v1683_v52, %v473_v46 }
 0x121   : > { %v519_v62 = vadd.f32 %v503_v58, %v418_v35 }
 0x123   : > { %v667_v2 = vpop.permute.xlu1 %666  ;;  %v620_v27 = vadd.f32 %v604_v56, %v519_v62 }
 0x124   : > { %v703_v41 = vmul.f32 %v1702_v60, %v667_v2 }
 0x126   : > { %v719_v4 = vadd.f32 %v703_v41, %v618_v3 }
 0x127   : > { %v671_v5 = vpop.permute.xlu1 %670 }
 0x128   : > { %v735_v6 = vmax.f32 %v719_v4, 0.0  ;;  %v704_v7 = vmul.f32 %v1702_v60, %v671_v5 }
 0x12a   : > { %v720_v8 = vadd.f32 %v704_v7, %v619_v42  ;;  %1295 = vmatprep.mubr.f32.mxu0 %v735_v6 }
 0x12c   : > { %v736_v36 = vmax.f32 %v720_v8, 0.0  ;;  %v373_v9 = vpop.permute.xlu1 %372 }
 0x12d   : > { %v398_v26 = vmul.f32 %v1678_v51, %v373_v9 }
 0x12e   : > { %1296 = vmatmul.mubr.f32.gmra.mrb[10].mxu0 %v736_v36 }
 0x12f   : > { %v420_v32 = vadd.f32 %v1688_v53, %v398_v26 }
 0x130   : > { %v378_v11 = vpop.permute.xlu1 %377 }
 0x131   : > { %v521_v37 = vadd.f32 %v505_v34, %v420_v32  ;;  %v399_v40 = vmul.f32 %v1678_v51, %v378_v11  ;;  %v1180_v51 = vld [vmem:[%s1920_s4] ss:$0 sm:$0xff] }
 0x133   : > { %v421_v44 = vadd.f32 %v1688_v53, %v399_v40 }
 0x135   : > { %v578_v14 = vpop.permute.xlu1 %577 }
 0x136   : > { %v605_v18 = vmul.f32 %v1694_v57, %v578_v14 }
 0x138   : > { %v621_v19 = vadd.f32 %v605_v18, %v520_v17 }
 0x13a   : > { %v675_v21 = vpop.permute.xlu1 %674  ;;  %v722_v24 = vadd.f32 %v706_v20, %v621_v19 }
 0x13b   : > { %v705_v23 = vmul.f32 %v1702_v60, %v675_v21 }
 0x13c   : > { %v738_v49 = vmax.f32 %v722_v24, 0.0 }
 0x13d   : > { %v721_v28 = vadd.f32 %v705_v23, %v620_v27 }
 0x13f   : > { %v737_v29 = vmax.f32 %v721_v28, 0.0  ;;  %v485_v30 = vpop.permute.xlu1 %484 }
 0x140   : > { %v506_v0 = vmul.f32 %v1683_v52, %v485_v30 }
 0x141   : > { %1298 = vmatprep.mubr.f32.mxu0 %v737_v29 }
 0x142   : > { %1299 = vmatmul.mubr.f32.gmra.mrb[12].mxu0 %v738_v49  ;;  %v522_v50 = vadd.f32 %v506_v0, %v421_v44 }
 0x144   : > { %v582_v15 = vpop.permute.xlu1 %581 }
 0x145   : > { %v606_v38 = vmul.f32 %v1694_v57, %v582_v15 }
 0x147   : > { %v622_v22 = vadd.f32 %v606_v38, %v521_v37 }
 0x148   : > { %v586_v42 = vpop.permute.xlu1 %585 }
 0x149   : > { %v723_v43 = vadd.f32 %v707_v39, %v622_v22  ;;  %v607_v45 = vmul.f32 %v1694_v57, %v586_v42  ;;  %v1181_v39 = vld [vmem:[%s1922_s6] ss:$0 sm:$0xff] }
 0x14b   : > { %v739_v48 = vmax.f32 %v723_v43, 0.0  ;;  %v623_v33 = vadd.f32 %v607_v45, %v522_v50 }
 0x14d   : > { %1301 = vmatprep.mubr.f32.mxu0 %v739_v48  ;;  %v687_v54 = vpop.permute.xlu1 %686 }
 0x14e   : > { %v708_v55 = vmul.f32 %v1702_v60, %v687_v54 }
 0x150   : > { %v724_v25 = vadd.f32 %v708_v55, %v623_v33 }
 0x152   : > { %v740_v46 = vmax.f32 %v724_v25, 0.0 }
 0x154   : > { %1302 = vmatmul.mubr.f32.gmra.mrb[14].mxu0 %v740_v46 }
 0x185   : > { %v1282_v52 = vpop.f32.mrb[0].mxu0 }
 0x186   : > { %v836_v35 = vadd.f32 %v1282_v52, %v1180_v51  ;;  %v830_v56 = vpop.f32.mrb[1].mxu0 }
 0x187   : > { %v831_v53 = vadd.f32 %v1180_v51, %v830_v56 }
 0x188   : > { %v910_v57 = vmax.f32 %v836_v35, 0.0 }
 0x189   : > { %v909_v58 = vmax.f32 %v831_v53, 0.0 }
 0x18b   : > { %1336 = vmatprep.mubr.f32.mxu1 %v909_v58 }
 0x18c   : > { %1337 = vmatmul.mubr.f32.vlgmr.msra.gmra.mrb[0].mxu1 %v910_v57 }
 0x1b2   : > { %v1285_v59 = vpop.f32.mrb[2].mxu0 }
 0x1b3   : > { %v846_v61 = vadd.f32 %v1285_v59, %v1180_v51  ;;  %v840_v62 = vpop.f32.mrb[3].mxu0 }
 0x1b4   : > { %v841_v63 = vadd.f32 %v1180_v51, %v840_v62 }
 0x1b5   : > { %v912_v27 = vmax.f32 %v846_v61, 0.0 }
 0x1b6   : > { %v911_v60 = vmax.f32 %v841_v63, 0.0  ;;  %v1288_v2 = vpop.f32.mrb[4].mxu0 }
 0x1b7   : > { %v856_v3 = vadd.f32 %v1288_v2, %v1180_v51  ;;  %v850_v41 = vpop.f32.mrb[5].mxu0 }
 0x1b8   : > { %v851_v4 = vadd.f32 %v1180_v51, %v850_v41  ;;  %1339 = vmatprep.mubr.f32.mxu1 %v911_v60 }
 0x1b9   : > { %1340 = vmatmul.mubr.f32.gmra.mrb[2].mxu1 %v912_v27  ;;  %v914_v6 = vmax.f32 %v856_v3, 0.0 }
 0x1ba   : > { %v913_v5 = vmax.f32 %v851_v4, 0.0 }
 0x1bc   : > { %1342 = vmatprep.mubr.f32.mxu1 %v913_v5 }
 0x1bd   : > { %1343 = vmatmul.mubr.f32.gmra.mrb[4].mxu1 %v914_v6 }
 0x1c9   : > { %v1291_v7 = vpop.f32.mrb[6].mxu0 }
 0x1ca   : > { %v866_v8 = vadd.f32 %v1291_v7, %v1180_v51  ;;  %v860_v36 = vpop.f32.mrb[7].mxu0 }
 0x1cb   : > { %v861_v9 = vadd.f32 %v1180_v51, %v860_v36 }
 0x1cc   : > { %v916_v31 = vmax.f32 %v866_v8, 0.0 }
 0x1cd   : > { %v915_v10 = vmax.f32 %v861_v9, 0.0 }
 0x1cf   : > { %1345 = vmatprep.mubr.f32.mxu1 %v915_v10 }
 0x1d0   : > { %1346 = vmatmul.mubr.f32.gmra.mrb[6].mxu1 %v916_v31 }
 0x1e9   : > { %v1294_v11 = vpop.f32.mrb[8].mxu0 }
 0x1ea   : > { %v876_v12 = vadd.f32 %v1294_v11, %v1180_v51  ;;  %v870_v47 = vpop.f32.mrb[9].mxu0 }
 0x1eb   : > { %v871_v13 = vadd.f32 %v1180_v51, %v870_v47 }
 0x1ec   : > { %v918_v16 = vmax.f32 %v876_v12, 0.0 }
 0x1ed   : > { %v917_v14 = vmax.f32 %v871_v13, 0.0 }
 0x1ef   : > { %1348 = vmatprep.mubr.f32.mxu1 %v917_v14 }
 0x1f0   : > { %1349 = vmatmul.mubr.f32.gmra.mrb[8].mxu1 %v918_v16 }
 0x201   : > { %v1297_v17 = vpop.f32.mrb[10].mxu0 }
 0x202   : > { %v886_v18 = vadd.f32 %v1297_v17, %v1180_v51  ;;  %v880_v19 = vpop.f32.mrb[11].mxu0 }
 0x203   : > { %v881_v20 = vadd.f32 %v1180_v51, %v880_v19 }
 0x204   : > { %v920_v23 = vmax.f32 %v886_v18, 0.0 }
 0x205   : > { %v919_v21 = vmax.f32 %v881_v20, 0.0 }
 0x207   : > { %1351 = vmatprep.mubr.f32.mxu1 %v919_v21 }
 0x208   : > { %1352 = vmatmul.mubr.f32.gmra.mrb[10].mxu1 %v920_v23 }
 0x215   : > { %v1300_v24 = vpop.f32.mrb[12].mxu0 }
 0x216   : > { %v896_v26 = vadd.f32 %v1300_v24, %v1180_v51  ;;  %v890_v28 = vpop.f32.mrb[13].mxu0 }
 0x217   : > { %v891_v29 = vadd.f32 %v1180_v51, %v890_v28 }
 0x218   : > { %v922_v49 = vmax.f32 %v896_v26, 0.0 }
 0x219   : > { %v921_v30 = vmax.f32 %v891_v29, 0.0 }
 0x21b   : > { %1354 = vmatprep.mubr.f32.mxu1 %v921_v30 }
 0x21c   : > { %1355 = vmatmul.mubr.f32.gmra.mrb[12].mxu1 %v922_v49 }
 0x227   : > { %v1303_v32 = vpop.f32.mrb[14].mxu0 }
 0x228   : > { %v906_v34 = vadd.f32 %v1303_v32, %v1180_v51  ;;  %v900_v1 = vpop.f32.mrb[15].mxu0 }
 0x229   : > { %v901_v15 = vadd.f32 %v1180_v51, %v900_v1 }
 0x22a   : > { %v924_v38 = vmax.f32 %v906_v34, 0.0 }
 0x22b   : > { %v923_v37 = vmax.f32 %v901_v15, 0.0 }
 0x22d   : > { %1357 = vmatprep.mubr.f32.mxu1 %v923_v37 }
 0x22e   : > { %1358 = vmatmul.mubr.f32.gmra.mrb[14].mxu1 %v924_v38 }
 0x25f   : > { %v1338_v40 = vpop.f32.mrb[0].mxu1 }
 0x260   : > { %v1020_v22 = vadd.f32 %v1338_v40, %v1181_v39  ;;  %v1014_v0 = vpop.f32.mrb[1].mxu1 }
 0x261   : > { %v1015_v42 = vadd.f32 %v1181_v39, %v1014_v0 }
 0x262   : > { %1095 = vst.msk [vmem:[%s1879_s10 + $0x8] sm:$0xff] %vm1093_vm0, %v1020_v22 }
 0x263   : > { %1094 = vst.msk [vmem:[%s1879_s10] sm:$0xff] %vm1093_vm0, %v1015_v42 }
 0x28c   : > { %v1341_v43 = vpop.f32.mrb[2].mxu1 }
 0x28d   : > { %v1030_v44 = vadd.f32 %v1341_v43, %v1181_v39  ;;  %v1024_v45 = vpop.f32.mrb[3].mxu1 }
 0x28e   : > { %v1025_v48 = vadd.f32 %v1181_v39, %v1024_v45 }
 0x28f   : > { %1097 = vst.msk [vmem:[%s1879_s10 + $0x18] sm:$0xff] %vm1093_vm0, %v1030_v44 }
 0x290   : > { %1096 = vst.msk [vmem:[%s1879_s10 + $0x10] sm:$0xff] %vm1093_vm0, %v1025_v48  ;;  %v1344_v50 = vpop.f32.mrb[4].mxu1 }
 0x291   : > { %v1040_v54 = vadd.f32 %v1344_v50, %v1181_v39  ;;  %v1034_v33 = vpop.f32.mrb[5].mxu1 }
 0x292   : > { %v1035_v55 = vadd.f32 %v1181_v39, %v1034_v33 }
 0x293   : > { %1099 = vst.msk [vmem:[%s1879_s10 + $0x28] sm:$0xff] %vm1093_vm0, %v1040_v54 }
 0x294   : > { %1098 = vst.msk [vmem:[%s1879_s10 + $0x20] sm:$0xff] %vm1093_vm0, %v1035_v55 }
 0x2a3   : > { %v1347_v25 = vpop.f32.mrb[6].mxu1 }
 0x2a4   : > { %v1050_v46 = vadd.f32 %v1347_v25, %v1181_v39  ;;  %v1044_v51 = vpop.f32.mrb[7].mxu1 }
 0x2a5   : > { %v1045_v52 = vadd.f32 %v1181_v39, %v1044_v51 }
 0x2a6   : > { %1101 = vst.msk [vmem:[%s1879_s10 + $0x38] sm:$0xff] %vm1093_vm0, %v1050_v46 }
 0x2a7   : > { %1100 = vst.msk [vmem:[%s1879_s10 + $0x30] sm:$0xff] %vm1093_vm0, %v1045_v52 }
 0x2c3   : > { %v1350_v35 = vpop.f32.mrb[8].mxu1 }
 0x2c4   : > { %v1060_v56 = vadd.f32 %v1350_v35, %v1181_v39  ;;  %v1054_v53 = vpop.f32.mrb[9].mxu1 }
 0x2c5   : > { %v1055_v58 = vadd.f32 %v1181_v39, %v1054_v53 }
 0x2c6   : > { %1103 = vst.msk [vmem:[%s1879_s10 + $0x48] sm:$0xff] %vm1093_vm0, %v1060_v56 }
 0x2c7   : > { %1102 = vst.msk [vmem:[%s1879_s10 + $0x40] sm:$0xff] %vm1093_vm0, %v1055_v58 }
 0x2db   : > { %v1353_v57 = vpop.f32.mrb[10].mxu1 }
 0x2dc   : > { %v1070_v59 = vadd.f32 %v1353_v57, %v1181_v39  ;;  %v1064_v61 = vpop.f32.mrb[11].mxu1 }
 0x2dd   : > { %v1065_v62 = vadd.f32 %v1181_v39, %v1064_v61 }
 0x2de   : > { %1105 = vst.msk [vmem:[%s1879_s10 + $0x58] sm:$0xff] %vm1093_vm0, %v1070_v59 }
 0x2df   : > { %1104 = vst.msk [vmem:[%s1879_s10 + $0x50] sm:$0xff] %vm1093_vm0, %v1065_v62 }
 0x2ef   : > { %v1356_v63 = vpop.f32.mrb[12].mxu1 }
 0x2f0   : > { %v1080_v60 = vadd.f32 %v1356_v63, %v1181_v39  ;;  %v1074_v2 = vpop.f32.mrb[13].mxu1 }
 0x2f1   : > { %v1075_v27 = vadd.f32 %v1181_v39, %v1074_v2 }
 0x2f2   : > { %1107 = vst.msk [vmem:[%s1879_s10 + $0x68] sm:$0xff] %vm1093_vm0, %v1080_v60 }
 0x2f3   : > { %1106 = vst.msk [vmem:[%s1879_s10 + $0x60] sm:$0xff] %vm1093_vm0, %v1075_v27 }
 0x301   : > { %v1359_v3 = vpop.f32.mrb[14].mxu1 }
 0x302   : > { %v1090_v41 = vadd.f32 %v1359_v3, %v1181_v39  ;;  %v1084_v4 = vpop.f32.mrb[15].mxu1 }
 0x303   : > { %v1085_v5 = vadd.f32 %v1181_v39, %v1084_v4 }
 0x304   : > { %1109 = vst.msk [vmem:[%s1879_s10 + $0x78] sm:$0xff] %vm1093_vm0, %v1090_v41 }
 0x305   : > { %1108 = vst.msk [vmem:[%s1879_s10 + $0x70] sm:$0xff] %vm1093_vm0, %v1085_v5 }
 0x306 PF: > { %s17_s24 = sadd.s32 1, %s1477_s24  }
 0x307   : > { %p14_p4 = scmp.ge.s32.totalorder %s17_s24, 4  }
 0x309   :  { %16 = sbr.rel (!%p14_p4) target bundleno = 1 (0x1), region = 78 }

</bundles_post_ra>
